<compile_context>
chip_gen: v7x
topology: tpu7x:2x2x1
jax: 0.10.0
libtpu: 0.0.40
codegen_flags: <defaults>
</compile_context>

<pallas_src>
import math
from functools import partial

import jax
import jax.numpy as jnp
from jax.experimental import pallas as pl
from jax.experimental.pallas import tpu as pltpu

X_edge = 1.0
Y_edge = 1.0
Z_edge = 1.0
_2PI = 2.0 * math.pi


def _round_up(v, m):
    return ((v + m - 1) // m) * m


def _pow2_floor(n):
    return 1 << (max(int(n), 1).bit_length() - 1)


def _sin_poly(z):
    """Odd degree-9 polynomial for sin(z), valid for |z| <= pi/2 (err < 4e-6)."""
    z2 = z * z
    return z * (1.0 + z2 * (-1.0 / 6.0 + z2 * (1.0 / 120.0
                + z2 * (-1.0 / 5040.0 + z2 * (1.0 / 362880.0)))))


def _axis_window(d, vmin, vmax, edge):
    """Partition-of-unity window along one axis (static branch selection)."""
    if vmin == 0:
        # 0 for d <= -1.25 ; 1 on (-1.25, 0.75] ; right taper ; 0 for d > 1.25
        t = jnp.clip(d, 0.75, 1.25)
        w = 0.5 - 0.5 * _sin_poly(_2PI * (t - 1.0))
        w = jnp.where(d <= 0.75, 1.0, w)
        w = jnp.where((d <= -1.25) | (d > 1.25), 0.0, w)
    elif vmax == edge:
        # 0 for d <= -1.25 ; left taper ; 1 on (-0.75, 1.25] ; 0 for d > 1.25
        t = jnp.clip(d, -1.25, -0.75)
        w = 0.5 + 0.5 * _sin_poly(_2PI * (t + 1.0))
        w = jnp.where(d > -0.75, 1.0, w)
        w = jnp.where((d <= -1.25) | (d > 1.25), 0.0, w)
    else:
        ad = jnp.abs(d)
        t = jnp.clip(ad, 0.75, 1.25)
        w = 0.5 - 0.5 * _sin_poly(_2PI * (t - 1.0))
        w = jnp.where(ad <= 0.75, 1.0, w)
        w = jnp.where(ad > 1.25, 0.0, w)
    return w


def _window_kernel(xcm_ref, win_ref, *, x_min, x_max, y_min, y_max,
                   z_min, z_max):
    """Point-dense window: xcm (3, tpr, 128) raw coords -> win (tpr, 128)."""
    ax = 2.0 / (x_max - x_min); cx = (x_max + x_min) / 2.0
    ay = 2.0 / (y_max - y_min); cy = (y_max + y_min) / 2.0
    az = 2.0 / (z_max - z_min); cz = (z_max + z_min) / 2.0
    dx = (xcm_ref[0] - cx) * ax
    dy = (xcm_ref[1] - cy) * ay
    dz = (xcm_ref[2] - cz) * az
    win_ref[...] = (_axis_window(dx, x_min, x_max, X_edge)
                    * _axis_window(dy, y_min, y_max, Y_edge)
                    * _axis_window(dz, z_min, z_max, Z_edge))


def _main_kernel(xw_ref, wb_ref, o_ref, *, lanes):
    """[coords | 1 | win] @ [scaled W + bias | expansion] -> tanh * window."""
    r = jnp.dot(xw_ref[...], wb_ref[...],
                preferred_element_type=jnp.float32,
                precision=jax.lax.Precision.HIGHEST)
    o_ref[...] = (jnp.tanh(r[:, :lanes]) * r[:, lanes:]).astype(o_ref.dtype)


def rfm_rep_forward(x, w, b, *, x_min, x_max, y_min, y_max, z_min, z_max,
                    tile_rows=4096, out_dtype=jnp.float32):
    """x: [N1,N2,N3,3], w: [3,M], b: [1,M] or [M] -> [N1,N2,N3,M]."""
    n1, n2, n3, c = x.shape
    assert c == 3
    M = w.shape[1]
    P = n1 * n2 * n3

    # --- output lane packing: lanes is always a multiple of 128 --------------
    if 128 % M == 0:                       # M in {1,2,...,128}: G points / row
        G, M_eff = 128 // M, M
    elif M % 128 == 0:                     # already lane-dense
        G, M_eff = 1, M
    else:                                  # pad features up to a 128 multiple
        G, M_eff = 1, _round_up(M, 128)
    lanes = G * M_eff

    # --- row tiling -----------------------------------------------------------
    rows = pl.cdiv(P, G)
    row_align = max(128, 1024 // G)        # keeps window blocks 8-aligned
    t = max(_pow2_floor(tile_rows), row_align)
    # prefer >=2 grid steps (v7x megacore) and limit padding waste
    while t > row_align and (t >= rows or _round_up(rows, t) - rows >= t // 2):
        t //= 2
    rows_pad = _round_up(rows, t)
    grid = rows_pad // t
    p_pad = rows_pad * G                   # multiple of 128

    # --- layout plumbing (cheap relative to the M-wide output) ---------------
    x_flat = x.reshape(P, 3).astype(jnp.float32)
    if p_pad != P:
        x_flat = jnp.pad(x_flat, ((0, p_pad - P), (0, 0)))
    x_cm = x_flat.T.reshape(3, p_pad // 128, 128)   # coordinate-major (dense)
    x_packed = x_flat.reshape(rows_pad, 3 * G)      # G points per output row

    # --- kernel 1: point-dense window -----------------------------------------
    tile_pr = t * G // 128
    win_pt = pl.pallas_call(
        partial(_window_kernel, x_min=x_min, x_max=x_max, y_min=y_min,
                y_max=y_max, z_min=z_min, z_max=z_max),
        out_shape=jax.ShapeDtypeStruct((p_pad // 128, 128), jnp.float32),
        grid_spec=pltpu.PrefetchScalarGridSpec(
            num_scalar_prefetch=0,
            grid=(grid,),
            in_specs=[pl.BlockSpec((3, tile_pr, 128), lambda i: (0, i, 0))],
            out_specs=pl.BlockSpec((tile_pr, 128), lambda i: (i, 0)),
        ),
        compiler_params=pltpu.CompilerParams(
            dimension_semantics=("parallel",)),
    )(x_cm)
    win3 = win_pt.reshape(rows_pad, G)              # contiguous, free

    # --- augmented LHS: [packed coords | 1 | per-group window | 0-pad] -------
    ncol = 3 * G + 1 + G
    K = _round_up(ncol, 8)
    parts = [x_packed, jnp.ones((rows_pad, 1), jnp.float32), win3]
    if K > ncol:
        parts.append(jnp.zeros((rows_pad, K - ncol), jnp.float32))
    xw = jnp.concatenate(parts, axis=1)

    # --- fused RHS: [linear part | window-expansion part] --------------------
    a = [2.0 / (x_max - x_min), 2.0 / (y_max - y_min), 2.0 / (z_max - z_min)]
    cc = [(x_max + x_min) / 2.0, (y_max + y_min) / 2.0, (z_max + z_min) / 2.0]
    w32 = w.astype(jnp.float32)
    b32 = b.astype(jnp.float32).reshape(-1)
    if M_eff != M:
        w32 = jnp.pad(w32, ((0, 0), (0, M_eff - M)))
        b32 = jnp.pad(b32, ((0, M_eff - M),))
    # bias with the affine shift folded in (elementwise, full f32 precision)
    bias_eff = b32 - (cc[0] * a[0] * w32[0] + cc[1] * a[1] * w32[1]
                      + cc[2] * a[2] * w32[2])
    wb = jnp.zeros((K, 2 * lanes), jnp.float32)
    for g in range(G):
        lo = g * M_eff
        for k in range(3):
            wb = wb.at[3 * g + k, lo:lo + M_eff].set(a[k] * w32[k])
        wb = wb.at[3 * G, lo:lo + M_eff].set(bias_eff)
        wb = wb.at[3 * G + 1 + g, lanes + lo:lanes + lo + M_eff].set(1.0)

    # --- kernel 2: one MXU matmul + tanh + window multiply -------------------
    out_packed = pl.pallas_call(
        partial(_main_kernel, lanes=lanes),
        out_shape=jax.ShapeDtypeStruct((rows_pad, lanes), out_dtype),
        grid_spec=pltpu.PrefetchScalarGridSpec(
            num_scalar_prefetch=0,
            grid=(grid,),
            in_specs=[
                pl.BlockSpec((t, K), lambda i: (i, 0)),
                pl.BlockSpec((K, 2 * lanes), lambda i: (0, 0)),
            ],
            out_specs=pl.BlockSpec((t, lanes), lambda i: (i, 0)),
        ),
        compiler_params=pltpu.CompilerParams(
            dimension_semantics=("parallel",)),
    )(xw, wb)

    out = out_packed.reshape(rows_pad * G, M_eff)[:P, :M]
    return out.reshape(n1, n2, n3, M)


def _reference_forward(x, w, b, *, x_min, x_max, y_min, y_max, z_min, z_max):
    """Pure-JAX mirror of the PyTorch forward (masks + jnp.sin), full f32."""
    w = w.astype(jnp.float32)
    bv = b.astype(jnp.float32).reshape(-1)
    d0 = (x[..., 0:1] - (x_min + x_max) / 2) / ((x_max - x_min) / 2)
    d1 = (x[..., 1:2] - (y_min + y_max) / 2) / ((y_max - y_min) / 2)
    d2 = (x[..., 2:3] - (z_min + z_max) / 2) / ((z_max - z_min) / 2)
    # Linear(3->M)+tanh without a default-precision TPU dot.
    y = jnp.tanh(d0 * w[0] + d1 * w[1] + d2 * w[2] + bv)

    def window(dd, vmin, vmax, edge):
        m1 = ((dd <= -0.75) & (dd > -1.25)).astype(jnp.float32)
        m2 = ((dd <= 0.75) & (dd > -0.75)).astype(jnp.float32)
        m3 = ((dd <= 1.25) & (dd > 0.75)).astype(jnp.float32)
        s = jnp.sin(_2PI * dd)
        if vmin == 0:
            return (m1 + m2) + m3 * (1.0 - s) * 0.5
        elif vmax == edge:
            return m1 * (1.0 + s) * 0.5 + (m2 + m3)
        else:
            return m1 * (1.0 + s) * 0.5 + m2 + m3 * (1.0 - s) * 0.5

    y = y * window(d0, x_min, x_max, X_edge)
    y = y * window(d1, y_min, y_max, Y_edge)
    y = y * window(d2, z_min, z_max, Z_edge)
    return y


if __name__ == "__main__":
    # Small shapes consistent with the module: 2x4x8 grid of 3-D points, M=32.
    N1, N2, N3, M = 2, 4, 8, 32

    # Domains exercise all three static branches:
    #   x-axis: interior (else), y-axis: y_min == 0, z-axis: z_max == Z_edge.
    x_min, x_max = 0.25, 0.75
    y_min, y_max = 0.0, 0.50
    z_min, z_max = 0.50, 1.00

    key = jax.random.PRNGKey(0)
    kx, kw, kb, kx2 = jax.random.split(key, 4)
    x = jax.random.uniform(kx, (N1, N2, N3, 3), jnp.float32)
    bound = 1.0 / math.sqrt(3.0)
    w = jax.random.uniform(kw, (3, M), jnp.float32, -bound, bound)
    b = jax.random.uniform(kb, (1, M), jnp.float32, -bound, bound)

    out = rfm_rep_forward(x, w, b, x_min=x_min, x_max=x_max, y_min=y_min,
                          y_max=y_max, z_min=z_min, z_max=z_max)
    out = jax.block_until_ready(out)
    ref = _reference_forward(x, w, b, x_min=x_min, x_max=x_max, y_min=y_min,
                             y_max=y_max, z_min=z_min, z_max=z_max)
    assert out.shape == (N1, N2, N3, M)
    assert jnp.allclose(out, ref, atol=3e-5, rtol=3e-5)

    # Second case: P = 1536 points with a forced small tile -> multi-step grid
    # plus the row-padding path.
    x2 = jax.random.uniform(kx2, (8, 16, 12, 3), jnp.float32)
    out2 = rfm_rep_forward(x2, w, b, x_min=x_min, x_max=x_max, y_min=y_min,
                           y_max=y_max, z_min=z_min, z_max=z_max,
                           tile_rows=256)
    out2 = jax.block_until_ready(out2)
    ref2 = _reference_forward(x2, w, b, x_min=x_min, x_max=x_max, y_min=y_min,
                              y_max=y_max, z_min=z_min, z_max=z_max)
    assert out2.shape == (8, 16, 12, M)
    assert jnp.allclose(out2, ref2, atol=3e-5, rtol=3e-5)

    print("KERNEL_OK")
</pallas_src>

<mosaic_0001>
module attributes {stable_mosaic.version = 11 : i64} {
  func.func @_window_kernel(%arg0: i32, %arg1: memref<3x8x128xf32, #tpu.memory_space<vmem>>, %arg2: memref<8x128xf32, #tpu.memory_space<vmem>>) attributes {dimension_semantics = [#tpu.dimension_semantics<parallel>], iteration_bounds = array<i64: 1>, scalar_prefetch = 0 : i64, scratch_operands = 0 : i64, tpu.core_type = #tpu.core_type<tc>, window_params = [{transform_indices = @transform_0, window_bounds = array<i64: 3, 8, 128>}, {transform_indices = @transform_1, window_bounds = array<i64: 8, 128>}]} {
    %c0 = arith.constant 0 : index
    %c0_0 = arith.constant 0 : index
    %c0_1 = arith.constant 0 : index
    %0 = vector.load %arg1[%c0, %c0_0, %c0_1] : memref<3x8x128xf32, #tpu.memory_space<vmem>>, vector<1x8x128xf32>
    %1 = vector.shape_cast %0 : vector<1x8x128xf32> to vector<8x128xf32>
    %cst = arith.constant 5.000000e-01 : f32
    %2 = vector.broadcast %cst : f32 to vector<8x128xf32>
    %3 = arith.subf %1, %2 : vector<8x128xf32>
    %cst_2 = arith.constant 4.000000e+00 : f32
    %4 = vector.broadcast %cst_2 : f32 to vector<8x128xf32>
    %5 = arith.mulf %3, %4 : vector<8x128xf32>
    %c1 = arith.constant 1 : index
    %c0_3 = arith.constant 0 : index
    %c0_4 = arith.constant 0 : index
    %6 = vector.load %arg1[%c1, %c0_3, %c0_4] : memref<3x8x128xf32, #tpu.memory_space<vmem>>, vector<1x8x128xf32>
    %7 = vector.shape_cast %6 : vector<1x8x128xf32> to vector<8x128xf32>
    %cst_5 = arith.constant 2.500000e-01 : f32
    %8 = vector.broadcast %cst_5 : f32 to vector<8x128xf32>
    %9 = arith.subf %7, %8 : vector<8x128xf32>
    %cst_6 = arith.constant 4.000000e+00 : f32
    %10 = vector.broadcast %cst_6 : f32 to vector<8x128xf32>
    %11 = arith.mulf %9, %10 : vector<8x128xf32>
    %c2 = arith.constant 2 : index
    %c0_7 = arith.constant 0 : index
    %c0_8 = arith.constant 0 : index
    %12 = vector.load %arg1[%c2, %c0_7, %c0_8] : memref<3x8x128xf32, #tpu.memory_space<vmem>>, vector<1x8x128xf32>
    %13 = vector.shape_cast %12 : vector<1x8x128xf32> to vector<8x128xf32>
    %cst_9 = arith.constant 7.500000e-01 : f32
    %14 = vector.broadcast %cst_9 : f32 to vector<8x128xf32>
    %15 = arith.subf %13, %14 : vector<8x128xf32>
    %cst_10 = arith.constant 4.000000e+00 : f32
    %16 = vector.broadcast %cst_10 : f32 to vector<8x128xf32>
    %17 = arith.mulf %15, %16 : vector<8x128xf32>
    %18 = math.absf %5 : vector<8x128xf32>
    %cst_11 = arith.constant 7.500000e-01 : f32
    %cst_12 = arith.constant 1.250000e+00 : f32
    %19 = vector.broadcast %cst_11 : f32 to vector<8x128xf32>
    %20 = arith.maximumf %19, %18 : vector<8x128xf32>
    %21 = vector.broadcast %cst_12 : f32 to vector<8x128xf32>
    %22 = arith.minimumf %21, %20 : vector<8x128xf32>
    %cst_13 = arith.constant 1.000000e+00 : f32
    %23 = vector.broadcast %cst_13 : f32 to vector<8x128xf32>
    %24 = arith.subf %22, %23 : vector<8x128xf32>
    %cst_14 = arith.constant 6.28318548 : f32
    %25 = vector.broadcast %cst_14 : f32 to vector<8x128xf32>
    %26 = arith.mulf %25, %24 : vector<8x128xf32>
    %27 = arith.mulf %26, %26 : vector<8x128xf32>
    %cst_15 = arith.constant 2.75573188E-6 : f32
    %28 = vector.broadcast %cst_15 : f32 to vector<8x128xf32>
    %29 = arith.mulf %27, %28 : vector<8x128xf32>
    %cst_16 = arith.constant -1.98412701E-4 : f32
    %30 = vector.broadcast %cst_16 : f32 to vector<8x128xf32>
    %31 = arith.addf %30, %29 : vector<8x128xf32>
    %32 = arith.mulf %27, %31 : vector<8x128xf32>
    %cst_17 = arith.constant 0.00833333377 : f32
    %33 = vector.broadcast %cst_17 : f32 to vector<8x128xf32>
    %34 = arith.addf %33, %32 : vector<8x128xf32>
    %35 = arith.mulf %27, %34 : vector<8x128xf32>
    %cst_18 = arith.constant -0.166666672 : f32
    %36 = vector.broadcast %cst_18 : f32 to vector<8x128xf32>
    %37 = arith.addf %36, %35 : vector<8x128xf32>
    %38 = arith.mulf %27, %37 : vector<8x128xf32>
    %cst_19 = arith.constant 1.000000e+00 : f32
    %39 = vector.broadcast %cst_19 : f32 to vector<8x128xf32>
    %40 = arith.addf %39, %38 : vector<8x128xf32>
    %41 = arith.mulf %26, %40 : vector<8x128xf32>
    %cst_20 = arith.constant 5.000000e-01 : f32
    %42 = vector.broadcast %cst_20 : f32 to vector<8x128xf32>
    %43 = arith.mulf %42, %41 : vector<8x128xf32>
    %cst_21 = arith.constant 5.000000e-01 : f32
    %44 = vector.broadcast %cst_21 : f32 to vector<8x128xf32>
    %45 = arith.subf %44, %43 : vector<8x128xf32>
    %cst_22 = arith.constant 7.500000e-01 : f32
    %46 = vector.broadcast %cst_22 : f32 to vector<8x128xf32>
    %47 = arith.cmpf ole, %18, %46 : vector<8x128xf32>
    %cst_23 = arith.constant 1.000000e+00 : f32
    %48 = vector.broadcast %cst_23 : f32 to vector<8x128xf32>
    %49 = arith.select %47, %48, %45 : vector<8x128xi1>, vector<8x128xf32>
    %cst_24 = arith.constant 1.250000e+00 : f32
    %50 = vector.broadcast %cst_24 : f32 to vector<8x128xf32>
    %51 = arith.cmpf ogt, %18, %50 : vector<8x128xf32>
    %cst_25 = arith.constant 0.000000e+00 : f32
    %52 = vector.broadcast %cst_25 : f32 to vector<8x128xf32>
    %53 = arith.select %51, %52, %49 : vector<8x128xi1>, vector<8x128xf32>
    %cst_26 = arith.constant 7.500000e-01 : f32
    %cst_27 = arith.constant 1.250000e+00 : f32
    %54 = vector.broadcast %cst_26 : f32 to vector<8x128xf32>
    %55 = arith.maximumf %54, %11 : vector<8x128xf32>
    %56 = vector.broadcast %cst_27 : f32 to vector<8x128xf32>
    %57 = arith.minimumf %56, %55 : vector<8x128xf32>
    %cst_28 = arith.constant 1.000000e+00 : f32
    %58 = vector.broadcast %cst_28 : f32 to vector<8x128xf32>
    %59 = arith.subf %57, %58 : vector<8x128xf32>
    %cst_29 = arith.constant 6.28318548 : f32
    %60 = vector.broadcast %cst_29 : f32 to vector<8x128xf32>
    %61 = arith.mulf %60, %59 : vector<8x128xf32>
    %62 = arith.mulf %61, %61 : vector<8x128xf32>
    %cst_30 = arith.constant 2.75573188E-6 : f32
    %63 = vector.broadcast %cst_30 : f32 to vector<8x128xf32>
    %64 = arith.mulf %62, %63 : vector<8x128xf32>
    %cst_31 = arith.constant -1.98412701E-4 : f32
    %65 = vector.broadcast %cst_31 : f32 to vector<8x128xf32>
    %66 = arith.addf %65, %64 : vector<8x128xf32>
    %67 = arith.mulf %62, %66 : vector<8x128xf32>
    %cst_32 = arith.constant 0.00833333377 : f32
    %68 = vector.broadcast %cst_32 : f32 to vector<8x128xf32>
    %69 = arith.addf %68, %67 : vector<8x128xf32>
    %70 = arith.mulf %62, %69 : vector<8x128xf32>
    %cst_33 = arith.constant -0.166666672 : f32
    %71 = vector.broadcast %cst_33 : f32 to vector<8x128xf32>
    %72 = arith.addf %71, %70 : vector<8x128xf32>
    %73 = arith.mulf %62, %72 : vector<8x128xf32>
    %cst_34 = arith.constant 1.000000e+00 : f32
    %74 = vector.broadcast %cst_34 : f32 to vector<8x128xf32>
    %75 = arith.addf %74, %73 : vector<8x128xf32>
    %76 = arith.mulf %61, %75 : vector<8x128xf32>
    %cst_35 = arith.constant 5.000000e-01 : f32
    %77 = vector.broadcast %cst_35 : f32 to vector<8x128xf32>
    %78 = arith.mulf %77, %76 : vector<8x128xf32>
    %cst_36 = arith.constant 5.000000e-01 : f32
    %79 = vector.broadcast %cst_36 : f32 to vector<8x128xf32>
    %80 = arith.subf %79, %78 : vector<8x128xf32>
    %cst_37 = arith.constant 7.500000e-01 : f32
    %81 = vector.broadcast %cst_37 : f32 to vector<8x128xf32>
    %82 = arith.cmpf ole, %11, %81 : vector<8x128xf32>
    %cst_38 = arith.constant 1.000000e+00 : f32
    %83 = vector.broadcast %cst_38 : f32 to vector<8x128xf32>
    %84 = arith.select %82, %83, %80 : vector<8x128xi1>, vector<8x128xf32>
    %cst_39 = arith.constant -1.250000e+00 : f32
    %85 = vector.broadcast %cst_39 : f32 to vector<8x128xf32>
    %86 = arith.cmpf ole, %11, %85 : vector<8x128xf32>
    %cst_40 = arith.constant 1.250000e+00 : f32
    %87 = vector.broadcast %cst_40 : f32 to vector<8x128xf32>
    %88 = arith.cmpf ogt, %11, %87 : vector<8x128xf32>
    %89 = arith.ori %86, %88 : vector<8x128xi1>
    %cst_41 = arith.constant 0.000000e+00 : f32
    %90 = vector.broadcast %cst_41 : f32 to vector<8x128xf32>
    %91 = arith.select %89, %90, %84 : vector<8x128xi1>, vector<8x128xf32>
    %92 = arith.mulf %53, %91 : vector<8x128xf32>
    %cst_42 = arith.constant -1.250000e+00 : f32
    %cst_43 = arith.constant -7.500000e-01 : f32
    %93 = vector.broadcast %cst_42 : f32 to vector<8x128xf32>
    %94 = arith.maximumf %93, %17 : vector<8x128xf32>
    %95 = vector.broadcast %cst_43 : f32 to vector<8x128xf32>
    %96 = arith.minimumf %95, %94 : vector<8x128xf32>
    %cst_44 = arith.constant 1.000000e+00 : f32
    %97 = vector.broadcast %cst_44 : f32 to vector<8x128xf32>
    %98 = arith.addf %96, %97 : vector<8x128xf32>
    %cst_45 = arith.constant 6.28318548 : f32
    %99 = vector.broadcast %cst_45 : f32 to vector<8x128xf32>
    %100 = arith.mulf %99, %98 : vector<8x128xf32>
    %101 = arith.mulf %100, %100 : vector<8x128xf32>
    %cst_46 = arith.constant 2.75573188E-6 : f32
    %102 = vector.broadcast %cst_46 : f32 to vector<8x128xf32>
    %103 = arith.mulf %101, %102 : vector<8x128xf32>
    %cst_47 = arith.constant -1.98412701E-4 : f32
    %104 = vector.broadcast %cst_47 : f32 to vector<8x128xf32>
    %105 = arith.addf %104, %103 : vector<8x128xf32>
    %106 = arith.mulf %101, %105 : vector<8x128xf32>
    %cst_48 = arith.constant 0.00833333377 : f32
    %107 = vector.broadcast %cst_48 : f32 to vector<8x128xf32>
    %108 = arith.addf %107, %106 : vector<8x128xf32>
    %109 = arith.mulf %101, %108 : vector<8x128xf32>
    %cst_49 = arith.constant -0.166666672 : f32
    %110 = vector.broadcast %cst_49 : f32 to vector<8x128xf32>
    %111 = arith.addf %110, %109 : vector<8x128xf32>
    %112 = arith.mulf %101, %111 : vector<8x128xf32>
    %cst_50 = arith.constant 1.000000e+00 : f32
    %113 = vector.broadcast %cst_50 : f32 to vector<8x128xf32>
    %114 = arith.addf %113, %112 : vector<8x128xf32>
    %115 = arith.mulf %100, %114 : vector<8x128xf32>
    %cst_51 = arith.constant 5.000000e-01 : f32
    %116 = vector.broadcast %cst_51 : f32 to vector<8x128xf32>
    %117 = arith.mulf %116, %115 : vector<8x128xf32>
    %cst_52 = arith.constant 5.000000e-01 : f32
    %118 = vector.broadcast %cst_52 : f32 to vector<8x128xf32>
    %119 = arith.addf %118, %117 : vector<8x128xf32>
    %cst_53 = arith.constant -7.500000e-01 : f32
    %120 = vector.broadcast %cst_53 : f32 to vector<8x128xf32>
    %121 = arith.cmpf ogt, %17, %120 : vector<8x128xf32>
    %cst_54 = arith.constant 1.000000e+00 : f32
    %122 = vector.broadcast %cst_54 : f32 to vector<8x128xf32>
    %123 = arith.select %121, %122, %119 : vector<8x128xi1>, vector<8x128xf32>
    %cst_55 = arith.constant -1.250000e+00 : f32
    %124 = vector.broadcast %cst_55 : f32 to vector<8x128xf32>
    %125 = arith.cmpf ole, %17, %124 : vector<8x128xf32>
    %cst_56 = arith.constant 1.250000e+00 : f32
    %126 = vector.broadcast %cst_56 : f32 to vector<8x128xf32>
    %127 = arith.cmpf ogt, %17, %126 : vector<8x128xf32>
    %128 = arith.ori %125, %127 : vector<8x128xi1>
    %cst_57 = arith.constant 0.000000e+00 : f32
    %129 = vector.broadcast %cst_57 : f32 to vector<8x128xf32>
    %130 = arith.select %128, %129, %123 : vector<8x128xi1>, vector<8x128xf32>
    %131 = arith.mulf %92, %130 : vector<8x128xf32>
    %c0_58 = arith.constant 0 : index
    %c0_59 = arith.constant 0 : index
    %132 = vector.load %arg2[%c0_58, %c0_59] : memref<8x128xf32, #tpu.memory_space<vmem>>, vector<8x128xf32>
    tpu.vector_store %arg2[%c0_58, %c0_59], %131 {strides = array<i32>} : memref<8x128xf32, #tpu.memory_space<vmem>>, vector<8x128xf32>,
    return
  }
  func.func @transform_0(%arg0: i32) -> (i32, i32, i32) {
    %c0_i32 = arith.constant 0 : i32
    %c0_i32_0 = arith.constant 0 : i32
    %c0_i32_1 = arith.constant 0 : i32
    return %c0_i32, %arg0, %c0_i32_0 : i32, i32, i32
  }
  func.func @transform_1(%arg0: i32) -> (i32, i32) {
    %c0_i32 = arith.constant 0 : i32
    %c0_i32_0 = arith.constant 0 : i32
    return %arg0, %c0_i32 : i32, i32
  }
}

</mosaic_0001>

<bundles_post_ra>
// kernel: tpu_custom_call.1
= control target key start
LH: loop header
LB: loop body
LE: loop exit
PB: predicated region body
PF: predicated region fallthrough
CT: control target
= control target key end

     0   :  { %6 = vsyncpa [#allocation3], 0  ;;  %s223_s0 = inlined_call_operand.hbm [shape: f32[3,8,128], index: 0, kind: input, shape index: {}]   ;;  %s224_s1 = inlined_call_operand.hbm [shape: f32[8,128], index: 1, kind: output, shape index: {}]  }
   0x1   :  { %7 = vsyncpa [#allocation4], 0  ;;  %s174_s6 = smov [#allocation2]   ;;  %s126_s10 = scalar_lea.hbm %s223_s0, 384 }
   0x2   :  { %s13_s7 = sshll.u32 %s174_s6, 4  ;;  %p127_p0 = scmp.ne.s32.totalorder %s223_s0, %s126_s10  ;;  %s14_s7 = int_to_ptr.vmem [resolvable:$true] %s13_s7 }
   0x3   :  { %p130_p1 = scmp.lt.u32.totalorder %s126_s10, %s223_s0 }
   0x5   :  { %p132_p2 = pnand %p130_p1, %p127_p0 }
   0x7   :  { %135 = shalt.err (!%p132_p2)
}
   0x8   :  { %s136_s15 = scalar_lea.vmem %s14_s7, 384  ;;  %p141_p4 = scmp.lt.s32.totalorder %s14_s7, %s14_s7 }
   0x9   :  { %p137_p3 = scmp.ne.s32.totalorder %s14_s7, %s136_s15  ;;  %p142_p5 = scmp.lt.s32.totalorder %s136_s15, %s136_s15 }
   0xb   :  { %p143_p6 = por %p142_p5, %p141_p4 }
   0xd   :  { %p144_p7 = pnand %p143_p6, %p137_p3 }
   0xf   :  { %147 = shalt.err (!%p144_p7)
}
  0x10   :  { %s175_s16 = smov 128   ;;  %s176_s17 = smov 8  }
  0x11   :  { %19 = dma.hbm_to_vmem [thread:$0]  %s223_s0, 384, %s14_s7, [#allocation3], %s175_s16, %s175_s16, %s176_s17  }
  0x12   :  { %170 = dma.done.wait [#allocation3], 384  }
  0x13   :  { %171 = vsyncadd [#allocation3], 4294966912  ;;  %v23_v0 = vld [vmem:[#allocation2] sm:$0xff]  ;;  %v27_v1 = vld [vmem:[#allocation2 + $0x8] sm:$0xff]  ;;  %s177_s0 = smov [#allocation5]  }
  0x14   :  { %v31_v2 = vld [vmem:[#allocation2 + $0x10] sm:$0xff]  ;;  %v117_v3 = vadd.f32 -0.5, %v23_v0  ;;  %v118_v4 = vadd.f32 -0.25, %v27_v1  ;;  %s108_s20 = sshll.u32 %s177_s0, 4  ;;  %s109_s20 = int_to_ptr.vmem [resolvable:$true] %s108_s20 }
  0x15   :  { %v119_v5 = vadd.f32 -0.75, %v31_v2  ;;  %s148_s21 = scalar_lea.vmem %s109_s20, 128  ;;  %p153_p9 = scmp.lt.s32.totalorder %s109_s20, %s109_s20 }
  0x16   :  { %v25_v6 = vmul.f32 4.0, %v117_v3  ;;  %v29_v7 = vmul.f32 4.0, %v118_v4  ;;  %p149_p8 = scmp.ne.s32.totalorder %s109_s20, %s148_s21  ;;  %p154_p10 = scmp.lt.s32.totalorder %s148_s21, %s148_s21 }
  0x17   :  { %v200_v8 = vmul.f32 4.0, %v119_v5 }
  0x18   :  { %v202_v9 = vand.u32 2147483647, %v25_v6  ;;  %v55_v10 = vmax.f32 %v29_v7, 0.75  ;;  %vm73_vm0 = vcmp.le.f32.partialorder %v29_v7, -1.25  ;;  %vm74_vm1 = vcmp.gt.f32.partialorder %v29_v7, 1.25  ;;  %p155_p11 = por %p154_p10, %p153_p9 }
  0x19   :  { %v78_v11 = vmax.f32 %v200_v8, -1.25  ;;  %vm71_vm2 = vcmp.le.f32.partialorder %v29_v7, 0.75  ;;  %vm96_vm3 = vcmp.le.f32.partialorder %v200_v8, -1.25  ;;  %vm97_vm4 = vcmp.gt.f32.partialorder %v200_v8, 1.25  ;;  %vm75_vm5 = vmor %vm73_vm0, %vm74_vm1 }
  0x1a   :  { %v35_v12 = vmax.f32 %v202_v9, 0.75  ;;  %v56_v13 = vmin.f32 %v55_v10, 1.25  ;;  %vm94_vm6 = vcmp.gt.f32.partialorder %v200_v8, -0.75  ;;  %vm51_vm7 = vcmp.le.f32.partialorder %v202_v9, 0.75  ;;  %vm98_vm9 = vmor %vm96_vm3, %vm97_vm4  ;;  %p156_p12 = pnand %p155_p11, %p149_p8 }
  0x1b   :  { %v79_v14 = vmin.f32 %v78_v11, -0.75  ;;  %vm53_vm8 = vcmp.gt.f32.partialorder %v202_v9, 1.25 }
  0x1c   :  { %v36_v15 = vmin.f32 %v35_v12, 1.25  ;;  %v121_v16 = vadd.f32 -1.0, %v56_v13 }
  0x1d   :  { %v80_v17 = vadd.f32 1.0, %v79_v14 }
  0x1e   :  { %v120_v18 = vadd.f32 -1.0, %v36_v15  ;;  %v58_v19 = vmul.f32 6.2831855, %v121_v16 }
  0x1f   :  { %v81_v20 = vmul.f32 6.2831855, %v80_v17 }
  0x20   :  { %v38_v21 = vmul.f32 6.2831855, %v120_v18  ;;  %v59_v22 = vmul.f32 %v58_v19, %v58_v19 }
  0x21   :  { %v82_v23 = vmul.f32 %v81_v20, %v81_v20 }
  0x22   :  { %v39_v24 = vmul.f32 %v38_v21, %v38_v21  ;;  %v60_v25 = vmul.f32 2.7557319e-06, %v59_v22 }
  0x23   :  { %v83_v26 = vmul.f32 2.7557319e-06, %v82_v23 }
  0x24   :  { %v40_v27 = vmul.f32 2.7557319e-06, %v39_v24  ;;  %v61_v28 = vadd.f32 -0.0001984127, %v60_v25 }
  0x25   :  { %v84_v29 = vadd.f32 -0.0001984127, %v83_v26 }
  0x26   :  { %v41_v30 = vadd.f32 -0.0001984127, %v40_v27  ;;  %v62_v31 = vmul.f32 %v61_v28, %v59_v22 }
  0x27   :  { %v85_v32 = vmul.f32 %v84_v29, %v82_v23 }
  0x28   :  { %v42_v33 = vmul.f32 %v41_v30, %v39_v24  ;;  %v63_v34 = vadd.f32 0.008333334, %v62_v31 }
  0x29   :  { %v86_v35 = vadd.f32 0.008333334, %v85_v32 }
  0x2a   :  { %v43_v36 = vadd.f32 0.008333334, %v42_v33  ;;  %v64_v37 = vmul.f32 %v63_v34, %v59_v22 }
  0x2b   :  { %v87_v38 = vmul.f32 %v86_v35, %v82_v23 }
  0x2c   :  { %v44_v39 = vmul.f32 %v43_v36, %v39_v24  ;;  %v65_v40 = vadd.f32 -0.16666667, %v64_v37 }
  0x2d   :  { %v88_v41 = vadd.f32 -0.16666667, %v87_v38 }
  0x2e   :  { %v45_v42 = vadd.f32 -0.16666667, %v44_v39  ;;  %v66_v43 = vmul.f32 %v65_v40, %v59_v22 }
  0x2f   :  { %v89_v44 = vmul.f32 %v88_v41, %v82_v23 }
  0x30   :  { %v46_v45 = vmul.f32 %v45_v42, %v39_v24  ;;  %v67_v46 = vadd.f32 1.0, %v66_v43 }
  0x31   :  { %v90_v47 = vadd.f32 1.0, %v89_v44 }
  0x32   :  { %v47_v48 = vadd.f32 1.0, %v46_v45  ;;  %v68_v49 = vmul.f32 %v67_v46, %v58_v19 }
  0x33   :  { %v91_v50 = vmul.f32 %v90_v47, %v81_v20 }
  0x34   :  { %v48_v51 = vmul.f32 %v47_v48, %v38_v21  ;;  %v69_v52 = vmul.f32 0.5, %v68_v49 }
  0x35   :  { %v92_v53 = vmul.f32 0.5, %v91_v50 }
  0x36   :  { %v49_v54 = vmul.f32 0.5, %v48_v51  ;;  %v70_v55 = vsub.f32 0.5, %v69_v52 }
  0x37   :  { %v93_v56 = vadd.f32 0.5, %v92_v53 }
  0x38   :  { %v50_v57 = vsub.f32 0.5, %v49_v54  ;;  %v72_v58 = vsel %vm71_vm2, 1.0, %v70_v55 }
  0x39   :  { %v76_v59 = vsel %vm75_vm5, 0.0, %v72_v58  ;;  %v95_v60 = vsel %vm94_vm6, 1.0, %v93_v56 }
  0x3a   :  { %v52_v61 = vsel %vm51_vm7, 1.0, %v50_v57  ;;  %v99_v63 = vsel %vm98_vm9, 0.0, %v95_v60 }
  0x3b   :  { %v54_v62 = vsel %vm53_vm8, 0.0, %v52_v61 }
  0x3c   :  { %v77_v0 = vmul.f32 %v76_v59, %v54_v62 }
  0x3e   :  { %v100_v1 = vmul.f32 %v99_v63, %v77_v0 }
  0x40   :  { %101 = vst [vmem:[#allocation5] sm:$0xff] %v100_v1 }
  0x41   :  { %159 = shalt.err (!%p156_p12)
}
  0x42   :  { %s160_s24 = scalar_lea.hbm %s224_s1, 128 }
  0x43   :  { %p161_p13 = scmp.ne.s32.totalorder %s224_s1, %s160_s24  ;;  %p164_p0 = scmp.lt.u32.totalorder %s160_s24, %s224_s1 }
  0x45   :  { %p166_p1 = pnand %p164_p0, %p161_p13 }
  0x47   :  { %169 = shalt.err (!%p166_p1)
}
  0x48   :  { %111 = dma.vmem_to_hbm [thread:$0]  %s109_s20, 128, %s224_s1, [#allocation4]  }
  0x49   :  { %172 = dma.done.wait [#allocation4], 128  }
  0x4a   :  { %173 = vsyncadd [#allocation4], 4294967168 }
  0x4b   :  { %115 = vsyncpa [#allocation3], 1 }
  0x4c   :  { %116 = vsyncpa [#allocation4], 1 }

</bundles_post_ra>
